<compile_context>
chip_gen: v5e
topology: v5e:2x2
jax: 0.10.0
libtpu: 0.0.40
codegen_flags: <defaults>
</compile_context>

<pallas_src>
import functools
import math

import jax
import jax.numpy as jnp
import numpy as np
from jax.experimental import pallas as pl
from jax.experimental.pallas import tpu as pltpu

_LANES = 128
_TARGET_TILE_BYTES = 2 * 1024 * 1024   # ~2 MiB per output buffer (double-buffered)


@functools.lru_cache(maxsize=None)
def _freqs_np(half_dim: int) -> np.ndarray:
    """Host-side (cached) frequency table: exp(arange(half) * -log(1e4)/(half-1))."""
    scale = math.log(10000.0) / (half_dim - 1)
    return np.exp(np.arange(half_dim, dtype=np.float32) * -scale)


def _pick_rows(total_rows: int, row_bytes: int) -> int:
    """Largest row-tile <= ~2 MiB, multiple of 8 (or the full extent if smaller)."""
    rows = max(8, (_TARGET_TILE_BYTES // row_bytes) // 8 * 8)
    return total_rows if rows >= total_rows else rows


# ---------------------------------------------------------------------------
# Kernels
# ---------------------------------------------------------------------------
def _general_kernel(x_ref, f_ref, out_ref, *, half):
    # x_ref: (TB, 1) f32, f_ref: (1, half) f32, out_ref: (TB, 2*half)
    emb = x_ref[...] * f_ref[...]                       # broadcast mul (VPU)
    out_ref[:, pl.ds(0, half)] = jnp.sin(emb).astype(out_ref.dtype)
    out_ref[:, pl.ds(half, half)] = jnp.cos(emb).astype(out_ref.dtype)


def _packed_kernel(x_ref, f_ref, out_ref, *, p, dim, half):
    # x_ref: (TR, p) f32  -- p batch timesteps per packed output row
    # f_ref: (1, 128) f32 -- [f0..f_{H-1}, f0..f_{H-1}] repeated p times
    # out_ref: (TR, 128)  -- lane-dense packed [sin|cos] for p batch rows
    x = x_ref[...]
    lane = jax.lax.broadcasted_iota(jnp.int32, (1, _LANES), 1)

    # Expand each of the p packed timesteps across its dim lanes (pure VPU,
    # free filler under the EUP bottleneck).  p is a small static int.
    xe = jnp.zeros((x.shape[0], _LANES), jnp.float32)
    for j in range(p):
        lo = j * dim
        in_pack = (lane >= lo) & (lane < lo + dim)
        xe = jnp.where(in_pack, x[:, j:j + 1], xe)

    emb = xe * f_ref[...]                               # (TR, 128), lane-dense
    # dim divides 128 on this path => dim is a power of two.
    sin_mask = (lane & (dim - 1)) < half
    out_ref[...] = jnp.where(sin_mask, jnp.sin(emb), jnp.cos(emb)).astype(out_ref.dtype)


# ---------------------------------------------------------------------------
# Wrapper
# ---------------------------------------------------------------------------
def sinusoidal_pos_emb(x: jax.Array, dim: int, *, out_dtype=jnp.float32) -> jax.Array:
    """JAX/Pallas equivalent of SinusoidalPosEmb.forward.  x: (B,) -> (B, dim)."""
    assert dim % 2 == 0 and dim >= 4, "dim must be even and >= 4 (dim==2 divides by zero)"
    half = dim // 2
    b = int(x.shape[0])
    x = x.astype(jnp.float32)
    freqs = _freqs_np(half)

    cparams = pltpu.CompilerParams(
        dimension_semantics=("parallel",),          # megacore split on v7x
        vmem_limit_bytes=32 * 1024 * 1024,
    )

    # --- Lane-dense packed path for small dim (the big measured lever). ---
    if dim < _LANES and _LANES % dim == 0:
        p = _LANES // dim
        b_pad = -(-b // p) * p
        if b_pad != b:
            x = jnp.concatenate([x, jnp.zeros((b_pad - b,), jnp.float32)])
        rows = b_pad // p
        x_pk = x.reshape(rows, p)
        f_pk = jnp.asarray(np.tile(freqs, 2 * p).reshape(1, _LANES))

        tr = _pick_rows(rows, _LANES * 4)
        grid = (pl.cdiv(rows, tr),)
        out = pl.pallas_call(
            functools.partial(_packed_kernel, p=p, dim=dim, half=half),
            out_shape=jax.ShapeDtypeStruct((rows, _LANES), out_dtype),
            grid=grid,
            in_specs=[
                pl.BlockSpec((tr, p), lambda i: (i, 0)),
                pl.BlockSpec((1, _LANES), lambda i: (0, 0)),   # resident, never re-DMA'd
            ],
            out_specs=pl.BlockSpec((tr, _LANES), lambda i: (i, 0)),
            compiler_params=cparams,
            cost_estimate=pl.CostEstimate(
                flops=2 * rows * _LANES,
                transcendentals=2 * rows * _LANES,
                bytes_accessed=4 * (rows * p + _LANES + rows * _LANES),
            ),
        )(x_pk, f_pk)
        out = out.reshape(b_pad, dim)        # wrapper-side layout plumbing
        return out[:b] if b_pad != b else out

    # --- General path (dim >= 128 or 128 % dim != 0): tile the batch axis. ---
    x2d = x.reshape(b, 1)
    f2d = jnp.asarray(freqs.reshape(1, half))
    tb = _pick_rows(b, dim * 4)
    grid = (pl.cdiv(b, tb),)
    return pl.pallas_call(
        functools.partial(_general_kernel, half=half),
        out_shape=jax.ShapeDtypeStruct((b, dim), out_dtype),
        grid=grid,
        in_specs=[
            pl.BlockSpec((tb, 1), lambda i: (i, 0)),
            pl.BlockSpec((1, half), lambda i: (0, 0)),         # resident
        ],
        out_specs=pl.BlockSpec((tb, dim), lambda i: (i, 0)),
        compiler_params=cparams,
        cost_estimate=pl.CostEstimate(
            flops=b * half,
            transcendentals=b * dim,
            bytes_accessed=4 * (b + half + b * dim),
        ),
    )(x2d, f2d)


# ---------------------------------------------------------------------------
# Reference + self-test
# ---------------------------------------------------------------------------
def _reference(x: jax.Array, dim: int) -> jax.Array:
    half = dim // 2
    freqs = jnp.asarray(_freqs_np(half))
    emb = x.astype(jnp.float32)[:, None] * freqs[None, :]
    return jnp.concatenate([jnp.sin(emb), jnp.cos(emb)], axis=-1)


if __name__ == "__main__":
    # Small-dim case (dim < 128): exercises the lane-dense packed path.
    b1, d1 = 8, 32
    x1 = jax.random.uniform(jax.random.PRNGKey(0), (b1,), dtype=jnp.float32) * 1000.0
    out1 = jax.block_until_ready(sinusoidal_pos_emb(x1, d1))
    assert out1.shape == (b1, d1)
    assert jnp.allclose(out1, _reference(x1, d1), atol=1e-5, rtol=1e-5)

    # Batch not a multiple of the pack factor: exercises padding / slicing.
    b2, d2 = 10, 32
    x2 = jax.random.uniform(jax.random.PRNGKey(1), (b2,), dtype=jnp.float32) * 1000.0
    out2 = jax.block_until_ready(sinusoidal_pos_emb(x2, d2))
    assert out2.shape == (b2, d2)
    assert jnp.allclose(out2, _reference(x2, d2), atol=1e-5, rtol=1e-5)

    # Wide-dim case (dim >= 128): exercises the general tiled path with
    # direct sliced sin/cos stores (no concatenate).
    b3, d3 = 16, 256
    x3 = jax.random.uniform(jax.random.PRNGKey(2), (b3,), dtype=jnp.float32) * 1000.0
    out3 = jax.block_until_ready(sinusoidal_pos_emb(x3, d3))
    assert out3.shape == (b3, d3)
    assert jnp.allclose(out3, _reference(x3, d3), atol=1e-5, rtol=1e-5)

    print("KERNEL_OK")
</pallas_src>

<mosaic_0001>
module attributes {stable_mosaic.version = 11 : i64} {
  func.func @_packed_kernel(%arg0: i32, %arg1: memref<2x4xf32, #tpu.memory_space<vmem>>, %arg2: memref<1x128xf32, #tpu.memory_space<vmem>>, %arg3: memref<2x128xf32, #tpu.memory_space<vmem>>) attributes {dimension_semantics = [#tpu.dimension_semantics<parallel>], iteration_bounds = array<i64: 1>, scalar_prefetch = 0 : i64, scratch_operands = 0 : i64, tpu.core_type = #tpu.core_type<tc>, window_params = [{transform_indices = @transform_0, window_bounds = array<i64: 2, 4>}, {pipeline_mode = #tpu.pipeline_mode<synchronous>, transform_indices = @transform_1, window_bounds = array<i64: 1, 128>}, {transform_indices = @transform_2, window_bounds = array<i64: 2, 128>}]} {
    %c0 = arith.constant 0 : index
    %c0_0 = arith.constant 0 : index
    %0 = vector.load %arg1[%c0, %c0_0] : memref<2x4xf32, #tpu.memory_space<vmem>>, vector<2x4xf32>
    %1 = tpu.iota {dimensions = array<i32: 1>} : vector<1x128xi32>
    %cst = arith.constant 0.000000e+00 : f32
    %2 = vector.broadcast %cst : f32 to vector<2x128xf32>
    %c0_i32 = arith.constant 0 : i32
    %3 = vector.broadcast %c0_i32 : i32 to vector<1x128xi32>
    %4 = arith.cmpi sge, %1, %3 : vector<1x128xi32>
    %c32_i32 = arith.constant 32 : i32
    %5 = vector.broadcast %c32_i32 : i32 to vector<1x128xi32>
    %6 = arith.cmpi slt, %1, %5 : vector<1x128xi32>
    %7 = arith.andi %4, %6 : vector<1x128xi1>
    %8 = vector.extract_strided_slice %0 {offsets = [0, 0], sizes = [2, 1], strides = [1, 1]} : vector<2x4xf32> to vector<2x1xf32>
    %9 = vector.shape_cast %7 : vector<1x128xi1> to vector<1x128xi1>
    %10 = vector.broadcast %9 : vector<1x128xi1> to vector<2x128xi1>
    %11 = vector.shape_cast %8 : vector<2x1xf32> to vector<2x1xf32>
    %12 = vector.broadcast %11 : vector<2x1xf32> to vector<2x128xf32>
    %13 = arith.select %10, %12, %2 : vector<2x128xi1>, vector<2x128xf32>
    %c32_i32_1 = arith.constant 32 : i32
    %14 = vector.broadcast %c32_i32_1 : i32 to vector<1x128xi32>
    %15 = arith.cmpi sge, %1, %14 : vector<1x128xi32>
    %c64_i32 = arith.constant 64 : i32
    %16 = vector.broadcast %c64_i32 : i32 to vector<1x128xi32>
    %17 = arith.cmpi slt, %1, %16 : vector<1x128xi32>
    %18 = arith.andi %15, %17 : vector<1x128xi1>
    %19 = vector.extract_strided_slice %0 {offsets = [0, 1], sizes = [2, 1], strides = [1, 1]} : vector<2x4xf32> to vector<2x1xf32>
    %20 = vector.shape_cast %18 : vector<1x128xi1> to vector<1x128xi1>
    %21 = vector.broadcast %20 : vector<1x128xi1> to vector<2x128xi1>
    %22 = vector.shape_cast %19 : vector<2x1xf32> to vector<2x1xf32>
    %23 = vector.broadcast %22 : vector<2x1xf32> to vector<2x128xf32>
    %24 = arith.select %21, %23, %13 : vector<2x128xi1>, vector<2x128xf32>
    %c64_i32_2 = arith.constant 64 : i32
    %25 = vector.broadcast %c64_i32_2 : i32 to vector<1x128xi32>
    %26 = arith.cmpi sge, %1, %25 : vector<1x128xi32>
    %c96_i32 = arith.constant 96 : i32
    %27 = vector.broadcast %c96_i32 : i32 to vector<1x128xi32>
    %28 = arith.cmpi slt, %1, %27 : vector<1x128xi32>
    %29 = arith.andi %26, %28 : vector<1x128xi1>
    %30 = vector.extract_strided_slice %0 {offsets = [0, 2], sizes = [2, 1], strides = [1, 1]} : vector<2x4xf32> to vector<2x1xf32>
    %31 = vector.shape_cast %29 : vector<1x128xi1> to vector<1x128xi1>
    %32 = vector.broadcast %31 : vector<1x128xi1> to vector<2x128xi1>
    %33 = vector.shape_cast %30 : vector<2x1xf32> to vector<2x1xf32>
    %34 = vector.broadcast %33 : vector<2x1xf32> to vector<2x128xf32>
    %35 = arith.select %32, %34, %24 : vector<2x128xi1>, vector<2x128xf32>
    %c96_i32_3 = arith.constant 96 : i32
    %36 = vector.broadcast %c96_i32_3 : i32 to vector<1x128xi32>
    %37 = arith.cmpi sge, %1, %36 : vector<1x128xi32>
    %c128_i32 = arith.constant 128 : i32
    %38 = vector.broadcast %c128_i32 : i32 to vector<1x128xi32>
    %39 = arith.cmpi slt, %1, %38 : vector<1x128xi32>
    %40 = arith.andi %37, %39 : vector<1x128xi1>
    %41 = vector.extract_strided_slice %0 {offsets = [0, 3], sizes = [2, 1], strides = [1, 1]} : vector<2x4xf32> to vector<2x1xf32>
    %42 = vector.shape_cast %40 : vector<1x128xi1> to vector<1x128xi1>
    %43 = vector.broadcast %42 : vector<1x128xi1> to vector<2x128xi1>
    %44 = vector.shape_cast %41 : vector<2x1xf32> to vector<2x1xf32>
    %45 = vector.broadcast %44 : vector<2x1xf32> to vector<2x128xf32>
    %46 = arith.select %43, %45, %35 : vector<2x128xi1>, vector<2x128xf32>
    %c0_4 = arith.constant 0 : index
    %c0_5 = arith.constant 0 : index
    %47 = vector.load %arg2[%c0_4, %c0_5] : memref<1x128xf32, #tpu.memory_space<vmem>>, vector<1x128xf32>
    %48 = vector.broadcast %47 : vector<1x128xf32> to vector<2x128xf32>
    %49 = arith.mulf %46, %48 : vector<2x128xf32>
    %c31_i32 = arith.constant 31 : i32
    %50 = vector.broadcast %c31_i32 : i32 to vector<1x128xi32>
    %51 = arith.andi %1, %50 : vector<1x128xi32>
    %c16_i32 = arith.constant 16 : i32
    %52 = vector.broadcast %c16_i32 : i32 to vector<1x128xi32>
    %53 = arith.cmpi slt, %51, %52 : vector<1x128xi32>
    %54 = math.sin %49 : vector<2x128xf32>
    %55 = math.cos %49 : vector<2x128xf32>
    %56 = vector.shape_cast %53 : vector<1x128xi1> to vector<1x128xi1>
    %57 = vector.broadcast %56 : vector<1x128xi1> to vector<2x128xi1>
    %58 = arith.select %57, %54, %55 : vector<2x128xi1>, vector<2x128xf32>
    %c0_6 = arith.constant 0 : index
    %c0_7 = arith.constant 0 : index
    %59 = vector.load %arg3[%c0_6, %c0_7] : memref<2x128xf32, #tpu.memory_space<vmem>>, vector<2x128xf32>
    tpu.vector_store %arg3[%c0_6, %c0_7], %58 {strides = array<i32>} : memref<2x128xf32, #tpu.memory_space<vmem>>, vector<2x128xf32>,
    return
  }
  func.func @transform_0(%arg0: i32) -> (i32, i32) {
    %c0_i32 = arith.constant 0 : i32
    %c0_i32_0 = arith.constant 0 : i32
    return %arg0, %c0_i32 : i32, i32
  }
  func.func @transform_1(%arg0: i32) -> (i32, i32) {
    %c0_i32 = arith.constant 0 : i32
    %c0_i32_0 = arith.constant 0 : i32
    %c0_i32_1 = arith.constant 0 : i32
    return %c0_i32, %c0_i32_0 : i32, i32
  }
  func.func @transform_2(%arg0: i32) -> (i32, i32) {
    %c0_i32 = arith.constant 0 : i32
    %c0_i32_0 = arith.constant 0 : i32
    return %arg0, %c0_i32 : i32, i32
  }
}

</mosaic_0001>

<bundles_post_ra>
// kernel: tpu_custom_call.1
= control target key start
LH: loop header
LB: loop body
LE: loop exit
PB: predicated region body
PF: predicated region fallthrough
CT: control target
= control target key end

     0   :  { %7 = vsyncpa [#allocation3], 0  ;;  %s638_s0 = inlined_call_operand.hbm [shape: f32[2,4], index: 0, kind: input, shape index: {}]   ;;  %s639_s1 = inlined_call_operand.hbm [shape: f32[1,128], index: 1, kind: input, shape index: {}]   ;;  %s640_s2 = inlined_call_operand.hbm [shape: f32[2,128], index: 2, kind: output, shape index: {}]  }
   0x1   :  { %8 = vsyncpa [#allocation6], 0 }
   0x2   :  { %9 = vsyncpa [#allocation4], 0  ;;  %s15_s11 = sshll.u32 %s638_s0, 4  ;;  %s525_s12 = smov [#allocation2]   ;;  %s16_s11 = int_to_ptr.hbm [resolvable:$true] %s15_s11 }
   0x3   :  { %s17_s13 = sshll.u32 %s525_s12, 4  ;;  %s26_s16 = sshll.u32 %s639_s1, 4  ;;  %s18_s13 = int_to_ptr.vmem [resolvable:$true] %s17_s13  ;;  %s27_s16 = int_to_ptr.hbm [resolvable:$true] %s26_s16 }
   0x4   :  { %20 = dma.hbm_to_vmem [thread:$0]  %s16_s11, 32, %s18_s13, [#allocation3]  }
   0x5   :  { %s526_s17 = smov [#allocation5]  }
   0x6   :  { %s28_s18 = sshll.u32 %s526_s17, 4  ;;  %s29_s18 = int_to_ptr.vmem [resolvable:$true] %s28_s18 }
   0x7   :  { %31 = dma.hbm_to_vmem [thread:$0]  %s27_s16, 16, %s29_s18, [#allocation6]  }
   0x8   :  { %519 = dma.done.wait [#allocation3], 32  }
   0x9   :  { %520 = vsyncadd [#allocation3], 4294967264 }
   0xa   :  { %521 = dma.done.wait [#allocation6], 16  }
   0xb   :  { %522 = vsyncadd [#allocation6], 4294967280  ;;  %v527_v0 = vmov 0   ;;  %v528_v1 = vmov 2   ;;  %v40_v2 = vld [vmem:[#allocation2] sm:$0x3]  ;;  %v41_v5 = vlaneseq }
   0xc   :  { %441 = vset.pattern.permute.xlu0 %v527_v0  ;;  %443 = vset.pattern.permute.xlu1 %v528_v1  ;;  %v529_v3 = vmov 1   ;;  %v530_v4 = vmov 3   ;;  %v446_v11 = vld [vmem:[#allocation5] ss:$0 sm:$0xff]  ;;  %v531_v28 = vmov 683565275  }
   0xd   :  { %50 = vperm.xlu0 %441, %v40_v2   ;;  %70 = vperm.xlu1 %443, %v40_v2   ;;  %v560_v8 = vand.u32 127, %v41_v5  ;;  %v532_v30 = vmov 2475754826   ;;  %v533_v33 = vmov 2131351028   ;;  %s537_s0 = smov [#allocation7]  }
   0xe   :  { %v534_v36 = vmov 2102212464   ;;  %v535_v39 = vmov 920167782   ;;  %v536_v42 = vmov 1326507024  }
   0xf   :  { %vm54_vm0 = vcmp.ge.s32.totalorder %v560_v8, 32  ;;  %vm55_vm1 = vcmp.lt.s32.totalorder %v560_v8, 64  ;;  %vm64_vm2 = vcmp.ge.s32.totalorder %v560_v8, 64  ;;  %vm65_vm3 = vcmp.lt.s32.totalorder %v560_v8, 96  ;;  %s409_s1 = sshll.u32 %s537_s0, 4  ;;  %s411_s21 = sshll.u32 %s640_s2, 4  ;;  %s410_s1 = int_to_ptr.vmem [resolvable:$true] %s409_s1  ;;  %s412_s21 = int_to_ptr.hbm [resolvable:$true] %s411_s21 }
  0x10   :  { %vm44_vm4 = vcmp.lt.s32.totalorder %v560_v8, 32  ;;  %vm56_vm5 = vmand %vm54_vm0, %vm55_vm1  ;;  %vm74_vm7 = vcmp.ge.s32.totalorder %v560_v8, 96 }
  0x11   :  { %vm66_vm6 = vmand %vm64_vm2, %vm65_vm3 }
  0x15   :  { %442 = vset.pattern.permute.xlu0 %v529_v3  ;;  %444 = vset.pattern.permute.xlu1 %v530_v4 }
  0x16   :  { %60 = vperm.xlu0 %442, %v40_v2   ;;  %80 = vperm.xlu1 %444, %v40_v2  }
  0x1e   :  { %445 = vset.pattern.permute.xlu0 %v530_v4 }
  0x7f   :  { %v51_v6 = vpop.permute.xlu0 %50  ;;  %v71_v7 = vpop.permute.xlu1 %70 }
  0x80   :  { %v53_v9 = vsel %vm44_vm4, %v51_v6, 0.0 }
  0x88   :  { %v61_v10 = vpop.permute.xlu0 %60  ;;  %v81_v12 = vpop.permute.xlu1 %80 }
  0x89   :  { %v63_v13 = vsel %vm56_vm5, %v61_v10, %v53_v9 }
  0x8a   :  { %v73_v14 = vsel %vm66_vm6, %v71_v7, %v63_v13 }
  0x8b   :  { %v83_v15 = vsel %vm74_vm7, %v81_v12, %v73_v14 }
  0x8c   :  { %v568_v16 = vmul.f32 %v446_v11, %v83_v15 }
  0x8e   :  { %v94_v17 = vand.u32 2139095040, %v568_v16  ;;  %v91_v20 = vand.u32 2147483647, %v568_v16  ;;  %vm93_vm4 = vcmp.lt.s32.totalorder %v568_v16, 0 }
  0x90   :  { %v95_v18 = vshrl.u32 %v94_v17, 23  ;;  %v98_v22 = vand.u32 8388607, %v91_v20  ;;  %vm92_vm5 = vcmp.le.f32.partialorder %v91_v20, 0.7853982  ;;  %v89_v20 = vand.u32 31, %v560_v8 }
  0x92   :  { %v422_v19 = vadd.s32 4294967169, %v95_v18  ;;  %v99_v26 = vor.u32 8388608, %v98_v22  ;;  %vm628_vm6 = vcmp.lt.s32.totalorder %v89_v20, 16 }
  0x94   :  { %v101_v21 = vadd.s32 1, %v422_v19  ;;  %v585_v49 = vshll.u32 %v99_v26, 8 }
  0x96   :  { %vm102_vm8 = vcmp.gt.s32.totalorder %v101_v21, 0  ;;  %v140_v58 = vand.u32 65535, %v585_v49  ;;  %v141_v59 = vshrl.u32 %v585_v49, 16 }
  0x97   :  { %v103_v23 = vsel %vm102_vm8, %v101_v21, 0 }
  0x98   :  { %v105_v24 = vand.u32 31, %v103_v23  ;;  %v576_v27 = vshrl.u32 %v103_v23, 5 }
  0x9a   :  { %v574_v25 = vsub.s32 32, %v105_v24  ;;  %v108_v29 = vshll.u32 %v531_v28, %v105_v24  ;;  %v111_v31 = vshll.u32 %v532_v30, %v105_v24  ;;  %v114_v35 = vshll.u32 %v533_v33, %v105_v24 }
  0x9b   :  { %v117_v38 = vshll.u32 %v534_v36, %v105_v24  ;;  %v120_v41 = vshll.u32 %v535_v39, %v105_v24  ;;  %vm123_vm9 = vcmp.lt.s32.totalorder %v576_v27, 1  ;;  %vm126_vm10 = vcmp.lt.s32.totalorder %v576_v27, 4 }
  0x9c   :  { %v109_v32 = vshrl.u32 %v532_v30, %v574_v25  ;;  %v112_v34 = vshrl.u32 %v533_v33, %v574_v25  ;;  %v115_v37 = vshrl.u32 %v534_v36, %v574_v25  ;;  %v118_v40 = vshrl.u32 %v535_v39, %v574_v25 }
  0x9d   :  { %v121_v43 = vshrl.u32 %v536_v42, %v574_v25  ;;  %vm125_vm11 = vcmp.lt.s32.totalorder %v576_v27, 3  ;;  %vm124_vm12 = vcmp.lt.s32.totalorder %v576_v27, 2  ;;  %v107_v24 = vshrl.u32 %v531_v28, %v574_v25 }
  0x9e   :  { %v110_v44 = vor.u32 %v109_v32, %v108_v29  ;;  %v113_v45 = vor.u32 %v112_v34, %v111_v31  ;;  %v116_v46 = vor.u32 %v115_v37, %v114_v35  ;;  %v119_v47 = vor.u32 %v118_v40, %v117_v38 }
  0x9f   :  { %v122_v48 = vor.u32 %v121_v43, %v120_v41 }
  0xa0   :  { %v131_v50 = vsel %vm123_vm9, %v110_v44, %v113_v45  ;;  %v135_v51 = vsel %vm123_vm9, %v113_v45, %v116_v46  ;;  %v132_v52 = vsel %vm126_vm10, %v119_v47, 920167782  ;;  %v128_v21 = vsel %vm126_vm10, %v116_v46, 2102212464 }
  0xa1   :  { %v136_v53 = vsel %vm126_vm10, %v122_v48, 1326507024  ;;  %v133_v54 = vsel %vm125_vm11, %v116_v46, %v132_v52  ;;  %v127_v33 = vsel %vm123_vm9, %v107_v24, %v110_v44  ;;  %v129_v34 = vsel %vm125_vm11, %v113_v45, %v128_v21 }
  0xa2   :  { %v137_v55 = vsel %vm125_vm11, %v119_v47, %v136_v53  ;;  %v134_v56 = vsel %vm124_vm12, %v131_v50, %v133_v54  ;;  %v130_v25 = vsel %vm124_vm12, %v127_v33, %v129_v34 }
  0xa3   :  { %v138_v57 = vsel %vm124_vm12, %v135_v51, %v137_v55  ;;  %v164_v62 = vand.u32 65535, %v134_v56  ;;  %v165_v63 = vshrl.u32 %v134_v56, 16  ;;  %v184_v41 = vmul.u32 %v585_v49, %v130_v25 }
  0xa4   :  { %v142_v60 = vand.u32 65535, %v138_v57  ;;  %v143_v61 = vshrl.u32 %v138_v57, 16 }
  0xa5   :  { %v167_v3 = vmul.u32 %v165_v63, %v140_v58  ;;  %v168_v4 = vmul.u32 %v164_v62, %v141_v59  ;;  %v166_v9 = vmul.u32 %v164_v62, %v140_v58  ;;  %v169_v13 = vmul.u32 %v165_v63, %v141_v59 }
  0xa6   :  { %v145_v1 = vmul.u32 %v143_v61, %v140_v58  ;;  %v146_v2 = vmul.u32 %v142_v60, %v141_v59  ;;  %v144_v5 = vmul.u32 %v142_v60, %v140_v58  ;;  %v147_v7 = vmul.u32 %v143_v61, %v141_v59 }
  0xa7   :  { %v170_v10 = vshll.u32 %v167_v3, 16  ;;  %v172_v15 = vshll.u32 %v168_v4, 16  ;;  %v171_v31 = vshrl.u32 %v167_v3, 16  ;;  %v173_v37 = vshrl.u32 %v168_v4, 16 }
  0xa8   :  { %v148_v6 = vshll.u32 %v145_v1, 16  ;;  %v150_v11 = vshll.u32 %v146_v2, 16  ;;  %v149_v26 = vshrl.u32 %v145_v1, 16  ;;  %v151_v35 = vshrl.u32 %v146_v2, 16 }
  0xa9   :  { %vm174_vm14 = vc.u32 %v166_v9, %v170_v10  ;;  %v176_v17 = vadd.s32 %v170_v10, %v166_v9 }
  0xaa   :  { %vm152_vm13 = vc.u32 %v144_v5, %v148_v6  ;;  %v154_v12 = vadd.s32 %v148_v6, %v144_v5  ;;  %v175_v19 = vsel %vm174_vm14, 1, %v527_v0 }
  0xab   :  { %v153_v14 = vsel %vm152_vm13, 1, %v527_v0  ;;  %v177_v23 = vadd.s32 %v175_v19, %v169_v13  ;;  %vm178_vm0 = vc.u32 %v176_v17, %v172_v15  ;;  %v180_v40 = vadd.s32 %v176_v17, %v172_v15 }
  0xac   :  { %v155_v18 = vadd.s32 %v153_v14, %v147_v7  ;;  %vm156_vm15 = vc.u32 %v154_v12, %v150_v11  ;;  %v179_v30 = vsel %vm178_vm0, 1, %v527_v0  ;;  %vm234_vm13 = vweird.f32 %v568_v16 }
  0xad   :  { %v157_v22 = vsel %vm156_vm15, 1, %v527_v0  ;;  %v181_v32 = vadd.s32 %v179_v30, %v177_v23 }
  0xae   :  { %v159_v29 = vadd.s32 %v157_v22, %v155_v18 }
  0xaf   :  { %v182_v38 = vadd.s32 %v181_v32, %v171_v31 }
  0xb0   :  { %v160_v36 = vadd.s32 %v159_v29, %v149_v26 }
  0xb1   :  { %v183_v28 = vadd.s32 %v182_v38, %v173_v37 }
  0xb2   :  { %v161_v39 = vadd.s32 %v160_v36, %v151_v35 }
  0xb3   :  { %v187_v0 = vadd.s32 1, %v183_v28 }
  0xb4   :  { %vm186_vm1 = vc.u32 %v161_v39, %v180_v40  ;;  %v185_v27 = vadd.s32 %v180_v40, %v161_v39 }
  0xb5   :  { %v188_v42 = vsel %vm186_vm1, %v187_v0, %v183_v28 }
  0xb6   :  { %v189_v43 = vadd.s32 %v188_v42, %v184_v41 }
  0xb8   :  { %v190_v44 = vadd.s32 536870912, %v189_v43 }
  0xba   :  { %v191_v46 = vshrl.u32 %v190_v44, 30 }
  0xbc   :  { %v192_v47 = vshll.u32 %v191_v46, 30  ;;  %v215_v4 = vsub.s32 4, %v191_v46 }
  0xbe   :  { %v193_v45 = vsub.s32 %v189_v43, %v192_v47  ;;  %v216_v9 = vsel %vm93_vm4, %v215_v4, %v191_v46 }
  0xbf   :  { %v218_v12 = vsel %vm92_vm5, 0, %v216_v9 }
  0xc0   :  { %vm194_vm2 = vcmp.lt.s32.totalorder %v193_v45, 0  ;;  %v195_v48 = vsub.s32 0, %v193_v45  ;;  %v235_v18 = vadd.s32 3, %v218_v12  ;;  %v390_v24 = vand.u32 3, %v218_v12 }
  0xc2   :  { %v196_v50 = vsel %vm194_vm2, %v195_v48, %v193_v45  ;;  %v236_v26 = vand.u32 3, %v235_v18  ;;  %vm391_vm7 = vcmp.lt.s32.totalorder %v390_v24, 2  ;;  %vm392_vm8 = vcmp.eq.s32.totalorder %v390_v24, 0 }
  0xc3   :  { %v197_v51 = vclz %v196_v50  ;;  %vm395_vm12 = vcmp.eq.s32.totalorder %v390_v24, 2 }
  0xc4   :  { %vm237_vm9 = vcmp.lt.s32.totalorder %v236_v26, 2  ;;  %vm238_vm10 = vcmp.eq.s32.totalorder %v236_v26, 0  ;;  %vm241_vm11 = vcmp.eq.s32.totalorder %v236_v26, 2 }
  0xc5   :  { %v423_v52 = vadd.s32 4294967294, %v197_v51 }
  0xc7   :  { %vm424_vm3 = vcmp.lt.s32.totalorder %v423_v52, 0 }
  0xc8   :  { %v200_v53 = vsel %vm424_vm3, 0, %v423_v52 }
  0xc9   :  { %v201_v54 = vsub.s32 32, %v200_v53  ;;  %v205_v55 = vsub.s32 4294967266, %v200_v53  ;;  %v202_v56 = vshll.u32 %v193_v45, %v200_v53 }
  0xcb   :  { %v203_v57 = vshrl.u32 %v185_v27, %v201_v54  ;;  %v206_v58 = vadd.s32 127, %v205_v55 }
  0xcd   :  { %v204_v49 = vor.u32 %v203_v57, %v202_v56  ;;  %v207_v59 = vshll.u32 %v206_v58, 23 }
  0xcf   :  { %v208_v60 = vor.u32 4788187, %v207_v59  ;;  %v211_v62 = vcvt.s32.f32 %v204_v49 }
  0xd1   :  { %v209_v61 = vand.u32 2147483647, %v208_v60 }
  0xd3   :  { %v212_v63 = vmul.f32 %v211_v62, %v209_v61 }
  0xd5   :  { %v213_v1 = vxor.u32 2147483648, %v212_v63 }
  0xd7   :  { %v214_v2 = vsel %vm93_vm4, %v213_v1, %v212_v63 }
  0xd8   :  { %v217_v3 = vsel %vm92_vm5, %v568_v16, %v214_v2 }
  0xd9   :  { %v219_v5 = vmul.f32 %v217_v3, %v217_v3 }
  0xdb   :  { %v220_v6 = vmul.f32 -0.001358992, %v219_v5  ;;  %v227_v7 = vmul.f32 -0.00019511016, %v219_v5 }
  0xdd   :  { %v221_v10 = vadd.f32 0.041655596, %v220_v6  ;;  %v228_v11 = vadd.f32 0.008332121, %v227_v7 }
  0xdf   :  { %v222_v13 = vmul.f32 %v221_v10, %v219_v5  ;;  %v229_v14 = vmul.f32 %v228_v11, %v219_v5 }
  0xe1   :  { %v223_v15 = vadd.f32 -0.4999988, %v222_v13  ;;  %v230_v17 = vadd.f32 -0.16666654, %v229_v14 }
  0xe3   :  { %v224_v19 = vmul.f32 %v223_v15, %v219_v5  ;;  %v231_v21 = vmul.f32 %v230_v17, %v219_v5 }
  0xe5   :  { %v225_v22 = vadd.f32 1.0, %v224_v19  ;;  %v232_v23 = vadd.f32 1.0, %v231_v21 }
  0xe7   :  { %v233_v29 = vmul.f32 %v232_v23, %v217_v3  ;;  %v242_v30 = vxor.u32 2147483648, %v225_v22 }
  0xe9   :  { %v239_v32 = vxor.u32 2147483648, %v233_v29  ;;  %v243_v33 = vsel %vm241_vm11, %v242_v30, %v233_v29  ;;  %v397_v35 = vsel %vm395_vm12, %v242_v30, %v233_v29 }
  0xeb   :  { %v240_v8 = vsel %vm238_vm10, %v225_v22, %v239_v32  ;;  %v394_v34 = vsel %vm392_vm8, %v225_v22, %v239_v32 }
  0xec   :  { %v244_v36 = vsel %vm237_vm9, %v240_v8, %v243_v33  ;;  %v398_v37 = vsel %vm391_vm7, %v394_v34, %v397_v35 }
  0xed   :  { %v245_v38 = vsel %vm234_vm13, nan, %v244_v36  ;;  %v399_v39 = vsel %vm234_vm13, nan, %v398_v37 }
  0xee   :  { %v402_v40 = vsel %vm628_vm6, %v245_v38, %v399_v39 }
  0xef   :  { %403 = vst [vmem:[#allocation7] sm:$0x3] %v402_v40 }
  0xf0   :  { %414 = dma.vmem_to_hbm [thread:$0]  %s410_s1, 32, %s412_s21, [#allocation4]  }
  0xf1   :  { %523 = dma.done.wait [#allocation4], 32  }
  0xf2   :  { %524 = vsyncadd [#allocation4], 4294967264 }
  0xf3   :  { %419 = vsyncpa [#allocation3], 1 }
  0xf4   :  { %420 = vsyncpa [#allocation6], 1 }
  0xf5   :  { %421 = vsyncpa [#allocation4], 1 }

</bundles_post_ra>
